<compile_context>
chip_gen: v6e
topology: v6e:2x2x1
jax: 0.10.0
libtpu: 0.0.40
codegen_flags: <defaults>
</compile_context>

<pallas_src>
import functools

import jax
import jax.numpy as jnp
from jax.experimental import pallas as pl
from jax.experimental.pallas import tpu as pltpu


def _round_up(x, m):
    return ((x + m - 1) // m) * m


def _tpu_vmem_capacity():
    try:
        return int(pltpu.get_tpu_info().vmem_capacity_bytes)
    except Exception:
        return 64 * 1024 * 1024  # conservative (v7x-sized) fallback


def _gelu_tanh(x):
    # PyTorch nn.GELU(approximate='tanh'), computed in f32.
    c = 0.7978845608028654  # sqrt(2/pi)
    return 0.5 * x * (1.0 + jnp.tanh(c * (x + 0.044715 * x * x * x)))


def _apply_act(x, act):
    if act == "gelu":
        return _gelu_tanh(x)
    if act == "relu":
        return jnp.maximum(x, 0.0)
    raise ValueError(f"unknown act: {act}")


def _largest_hidden_tile(H, cap):
    """Largest divisor of H that is a multiple of 128 and <= cap (else H)."""
    if H <= cap:
        return H
    t = (min(cap, H) // 128) * 128
    while t >= 128:
        if H % t == 0:
            return t
        t -= 128
    return H  # no 128-multiple divisor of H; fall back to full-H tiles


# ---------------------------------------------------------------------------
# Kernels
# ---------------------------------------------------------------------------
def _mlp_kernel_resident(x_ref, wfc_ref, wproj_ref, o_ref, *, act):
    # Weights fully VMEM-resident; only the token axis is tiled.
    # x_ref: [TM, E]  wfc_ref: [E, H]  wproj_ref: [H, E]  o_ref: [TM, E]
    h = jnp.dot(x_ref[...], wfc_ref[...], preferred_element_type=jnp.float32)
    h = _apply_act(h, act)
    y = jnp.dot(h.astype(wproj_ref.dtype), wproj_ref[...],
                preferred_element_type=jnp.float32)
    o_ref[...] = y.astype(o_ref.dtype)


def _mlp_kernel_stream(x_ref, wfc_ref, wproj_ref, o_ref, *scratch, act):
    # Hidden axis streamed in TH-sized tiles (trailing "arbitrary" axis).
    # f32 outputs accumulate directly into o_ref (it stays resident across the
    # reduction axis); otherwise an f32 VMEM scratch is used.
    acc_ref = scratch[0] if scratch else o_ref
    k = pl.program_id(1)

    @pl.when(k == 0)
    def _():
        acc_ref[...] = jnp.zeros_like(acc_ref)

    h = jnp.dot(x_ref[...], wfc_ref[...], preferred_element_type=jnp.float32)
    h = _apply_act(h, act)  # elementwise => exact per-H-tile
    acc_ref[...] += jnp.dot(h.astype(wproj_ref.dtype), wproj_ref[...],
                            preferred_element_type=jnp.float32)

    if scratch:
        @pl.when(k == pl.num_programs(1) - 1)
        def _():
            o_ref[...] = acc_ref[...].astype(o_ref.dtype)


# ---------------------------------------------------------------------------
# Wrappers
# ---------------------------------------------------------------------------
def mlp_forward_t(x, wfc_t, wproj_t, *, act="gelu", compute_dtype=None,
                  block_m=None, block_h=None):
    """Fused MLP forward: act(x @ wfc_t) @ wproj_t  (dropout = identity, eval).

    x:       [B, T, E]
    wfc_t:   [E, H]   (c_fc.weight pre-transposed)
    wproj_t: [H, E]   (c_proj.weight pre-transposed)

    Production: store x and the weights in bfloat16 and call with
    compute_dtype=None — the MXU runs at bf16 peak on v5e/v6e/v7x while all
    accumulation and GELU math stay in f32.  `compute_dtype` is a test
    convenience only (its astype emits separate XLA HBM copies).
    """
    orig_dtype = x.dtype
    B, T, E = x.shape
    E2, H = wfc_t.shape
    assert E2 == E and wproj_t.shape == (H, E)

    if compute_dtype is not None:
        x = x.astype(compute_dtype)
        wfc_t = wfc_t.astype(compute_dtype)
        wproj_t = wproj_t.astype(compute_dtype)

    in_isz = jnp.dtype(x.dtype).itemsize
    w_isz = jnp.dtype(wfc_t.dtype).itemsize
    out_isz = jnp.dtype(orig_dtype).itemsize
    # [TM, TH] f32 activation intermediate + its cast copy feeding matmul 2.
    h_isz = 4 + (w_isz if wfc_t.dtype != jnp.float32 else 0)

    M = B * T
    x2d = x.reshape(M, E)

    # ---- generation-aware budgets ----------------------------------------
    vmem_cap = _tpu_vmem_capacity()          # ~128 MiB (v5e/v6e), 64 MiB (v7x)
    budget = int(0.75 * vmem_cap)
    big_vmem = vmem_cap >= 100 * 1024 * 1024

    # Streaming arithmetic intensity ~= TM flops per weight byte: v6e needs
    # ~700, v7x ~350, v5e ~250 to be MXU-bound. 256-aligned for clean MXU use.
    if block_m is None:
        block_m = 768 if big_vmem else 512

    TM = M if M <= block_m else max(8, (block_m // 8) * 8)

    force_stream = block_h is not None and block_h < H

    flops = int(4 * M * E * H)
    transc = int(M * H) if act == "gelu" else 0

    # ---- weight-resident fast path (each weight byte DMA'd exactly once) --
    resident_need = (2 * TM * E * (in_isz + out_isz)   # double-buffered x / out
                     + 2 * E * H * w_isz               # both weights, 1 buffer
                     + TM * H * h_isz)                 # act intermediate
    use_resident = (not force_stream) and resident_need <= budget

    if use_resident:
        grid_m = pl.cdiv(M, TM)
        # Keep >= 2 M-tiles so both v7x TensorCores get work (weights are
        # resident, so this costs no extra DMA on any generation).
        if grid_m == 1 and M >= 16:
            TM = _round_up(pl.cdiv(M, 2), 8)
            grid_m = pl.cdiv(M, TM)

        cost = pl.CostEstimate(
            flops=flops, transcendentals=transc,
            bytes_accessed=int(M * E * (in_isz + out_isz) + 2 * E * H * w_isz),
        )

        def run_resident(single_buffer_weights):
            wkw = ({"pipeline_mode": pl.Buffered(1)}
                   if single_buffer_weights else {})
            grid_spec = pltpu.PrefetchScalarGridSpec(
                num_scalar_prefetch=0,
                grid=(grid_m,),
                in_specs=[
                    pl.BlockSpec((TM, E), lambda i: (i, 0)),
                    pl.BlockSpec((E, H), lambda i: (0, 0), **wkw),
                    pl.BlockSpec((H, E), lambda i: (0, 0), **wkw),
                ],
                out_specs=pl.BlockSpec((TM, E), lambda i: (i, 0)),
            )
            return pl.pallas_call(
                functools.partial(_mlp_kernel_resident, act=act),
                out_shape=jax.ShapeDtypeStruct((M, E), orig_dtype),
                grid_spec=grid_spec,
                compiler_params=pltpu.CompilerParams(
                    dimension_semantics=("parallel",),
                    vmem_limit_bytes=budget,
                ),
                cost_estimate=cost,
            )(x2d, wfc_t, wproj_t)

        try:
            # Constant-index weight specs: single-buffer them (halves resident
            # weight footprint).
            out2d = run_resident(True)
        except Exception:
            # Fallback if this lowering rejects Buffered(1) / pipeline_mode.
            out2d = run_resident(False)
        return out2d.reshape(B, T, E)

    # ---- streaming path: hidden axis as a trailing reduction --------------
    def _stream_fixed(tm):
        acc = 0 if orig_dtype == jnp.float32 else tm * E * 4
        return 2 * tm * E * (in_isz + out_isz) + acc

    def _stream_per_th(tm):
        # two weight tensors x two buffers, plus the [tm, TH] intermediate
        return 4 * E * w_isz + tm * h_isz

    # Shrink TM (never below 8 rows) until at least a 128-wide H tile fits.
    while TM > 8 and budget - _stream_fixed(TM) < 128 * _stream_per_th(TM):
        TM = max(8, _round_up(TM // 2, 8))

    th_budget = max(128, (budget - _stream_fixed(TM)) // _stream_per_th(TM))
    th_cap = min(th_budget, H if block_h is None else min(block_h, H))
    TH = _largest_hidden_tile(H, th_cap)   # divides H; multiple of 128 (or H)

    grid_m = pl.cdiv(M, TM)
    grid_h = H // TH

    use_scratch = orig_dtype != jnp.float32
    scratch_shapes = [pltpu.VMEM((TM, E), jnp.float32)] if use_scratch else []

    cost = pl.CostEstimate(
        flops=flops, transcendentals=transc,
        # weights are re-read once per M tile in the streaming schedule
        bytes_accessed=int(M * E * (in_isz + out_isz)
                           + grid_m * 2 * E * H * w_isz),
    )

    grid_spec = pltpu.PrefetchScalarGridSpec(
        num_scalar_prefetch=0,
        grid=(grid_m, grid_h),
        in_specs=[
            pl.BlockSpec((TM, E), lambda i, k: (i, 0)),
            pl.BlockSpec((E, TH), lambda i, k: (0, k)),
            pl.BlockSpec((TH, E), lambda i, k: (k, 0)),
        ],
        out_specs=pl.BlockSpec((TM, E), lambda i, k: (i, 0)),
        scratch_shapes=scratch_shapes,
    )

    out2d = pl.pallas_call(
        functools.partial(_mlp_kernel_stream, act=act),
        out_shape=jax.ShapeDtypeStruct((M, E), orig_dtype),
        grid_spec=grid_spec,
        compiler_params=pltpu.CompilerParams(
            dimension_semantics=("parallel", "arbitrary"),
            vmem_limit_bytes=budget,
        ),
        cost_estimate=cost,
    )(x2d, wfc_t, wproj_t)
    return out2d.reshape(B, T, E)


def mlp_forward(x, w_fc, w_proj, **kwargs):
    """Test-only convenience taking PyTorch nn.Linear weights ([out, in]).
    Production should store weights pre-transposed and call mlp_forward_t
    directly (the .T here is an extra HBM layout pass per call)."""
    return mlp_forward_t(x, w_fc.T, w_proj.T, **kwargs)


# ---------------------------------------------------------------------------
# Reference + demo
# ---------------------------------------------------------------------------
def _reference(x, w_fc, w_proj, act="gelu"):
    h = jnp.einsum("bte,he->bth", x.astype(jnp.float32), w_fc.astype(jnp.float32))
    h = _apply_act(h, act)
    return jnp.einsum("bth,eh->bte", h, w_proj.astype(jnp.float32))


if __name__ == "__main__":
    key = jax.random.PRNGKey(0)
    k1, k2, k3, k4, k5, k6 = jax.random.split(key, 6)

    # ---- Test 1: module config (n_embd=32, wide_factor=4), f32, resident
    #              path (with Buffered(1) weights + grid_m>=2), gelu + relu.
    B, T, n_embd, wide_factor = 2, 8, 32, 4
    hidden = wide_factor * n_embd

    x = jax.random.normal(k1, (B, T, n_embd), dtype=jnp.float32)
    # nn.Linear(in, out, bias=False) weight shape: [out, in]
    w_fc = jax.random.normal(k2, (hidden, n_embd), dtype=jnp.float32) * (n_embd ** -0.5)
    w_proj = jax.random.normal(k3, (n_embd, hidden), dtype=jnp.float32) * (hidden ** -0.5)

    out = jax.block_until_ready(mlp_forward(x, w_fc, w_proj, act="gelu"))
    ref = _reference(x, w_fc, w_proj, act="gelu")
    assert out.shape == (B, T, n_embd)
    assert jnp.allclose(out, ref, atol=1e-4, rtol=1e-4), "gelu mismatch vs reference"

    out_r = jax.block_until_ready(mlp_forward(x, w_fc, w_proj, act="relu"))
    ref_r = _reference(x, w_fc, w_proj, act="relu")
    assert jnp.allclose(out_r, ref_r, atol=1e-4, rtol=1e-4), "relu mismatch vs reference"

    # ---- Test 2: streaming path with ragged M tiles (no pad/slice), bf16
    #              operands, f32 accumulation directly into the output block.
    B2, T2, E2, H2 = 2, 72, 128, 512   # M = 144 -> tiles of 64, 64, 16
    x2 = jax.random.normal(k4, (B2, T2, E2), dtype=jnp.float32)
    w_fc2 = jax.random.normal(k5, (H2, E2), dtype=jnp.float32) * (E2 ** -0.5)
    w_proj2 = jax.random.normal(k6, (E2, H2), dtype=jnp.float32) * (H2 ** -0.5)

    out2 = jax.block_until_ready(
        mlp_forward(x2, w_fc2, w_proj2, act="gelu",
                    block_m=64, block_h=128, compute_dtype=jnp.bfloat16))
    ref2 = _reference(x2, w_fc2, w_proj2, act="gelu")
    assert out2.shape == (B2, T2, E2)
    assert jnp.allclose(out2, ref2, atol=5e-2, rtol=5e-2), "bf16 streaming mismatch"

    # ---- Test 3: streaming path, fully bf16 in/out (f32 scratch accumulator).
    x3 = x2.astype(jnp.bfloat16)
    w_fc3 = w_fc2.astype(jnp.bfloat16)
    w_proj3 = w_proj2.astype(jnp.bfloat16)
    out3 = jax.block_until_ready(
        mlp_forward(x3, w_fc3, w_proj3, act="gelu", block_m=64, block_h=128))
    ref3 = _reference(x3, w_fc3, w_proj3, act="gelu")
    assert out3.dtype == jnp.bfloat16
    assert jnp.allclose(out3.astype(jnp.float32), ref3, atol=8e-2, rtol=8e-2), \
        "bf16 in/out streaming mismatch"

    print("KERNEL_OK")
</pallas_src>

<mosaic_0001>
module attributes {stable_mosaic.version = 11 : i64} {
  func.func @_mlp_kernel_resident(%arg0: i32, %arg1: memref<8x32xf32, #tpu.memory_space<vmem>>, %arg2: memref<32x128xf32, #tpu.memory_space<vmem>>, %arg3: memref<128x32xf32, #tpu.memory_space<vmem>>, %arg4: memref<8x32xf32, #tpu.memory_space<vmem>>) attributes {dimension_semantics = [#tpu.dimension_semantics<parallel>], iteration_bounds = array<i64: 2>, scalar_prefetch = 0 : i64, scratch_operands = 0 : i64, tpu.core_type = #tpu.core_type<tc>, window_params = [{transform_indices = @transform_0, window_bounds = array<i64: 8, 32>}, {pipeline_mode = #tpu.pipeline_mode<synchronous>, transform_indices = @transform_1, window_bounds = array<i64: 32, 128>}, {pipeline_mode = #tpu.pipeline_mode<synchronous>, transform_indices = @transform_2, window_bounds = array<i64: 128, 32>}, {transform_indices = @transform_3, window_bounds = array<i64: 8, 32>}]} {
    %c0 = arith.constant 0 : index
    %c0_0 = arith.constant 0 : index
    %0 = vector.load %arg1[%c0, %c0_0] : memref<8x32xf32, #tpu.memory_space<vmem>>, vector<8x32xf32>
    %c0_1 = arith.constant 0 : index
    %c0_2 = arith.constant 0 : index
    %1 = vector.load %arg2[%c0_1, %c0_2] : memref<32x128xf32, #tpu.memory_space<vmem>>, vector<32x128xf32>
    %cst = arith.constant dense<0.000000e+00> : vector<8x128xf32>
    %2 = tpu.matmul %0, %1, %cst {dimension_numbers = #tpu.dot_dimension_numbers<[1], [0], [0], [1], [0, 0, 1, 1], [], []>} : vector<8x32xf32>, vector<32x128xf32>, vector<8x128xf32> -> vector<8x128xf32>
    %cst_3 = arith.constant 5.000000e-01 : f32
    %3 = vector.broadcast %cst_3 : f32 to vector<8x128xf32>
    %4 = arith.mulf %3, %2 : vector<8x128xf32>
    %cst_4 = arith.constant 4.471500e-02 : f32
    %5 = vector.broadcast %cst_4 : f32 to vector<8x128xf32>
    %6 = arith.mulf %5, %2 : vector<8x128xf32>
    %7 = arith.mulf %6, %2 : vector<8x128xf32>
    %8 = arith.mulf %7, %2 : vector<8x128xf32>
    %9 = arith.addf %2, %8 : vector<8x128xf32>
    %cst_5 = arith.constant 0.797884583 : f32
    %10 = vector.broadcast %cst_5 : f32 to vector<8x128xf32>
    %11 = arith.mulf %10, %9 : vector<8x128xf32>
    %12 = math.tanh %11 : vector<8x128xf32>
    %cst_6 = arith.constant 1.000000e+00 : f32
    %13 = vector.broadcast %cst_6 : f32 to vector<8x128xf32>
    %14 = arith.addf %13, %12 : vector<8x128xf32>
    %15 = arith.mulf %4, %14 : vector<8x128xf32>
    %c0_7 = arith.constant 0 : index
    %c0_8 = arith.constant 0 : index
    %16 = vector.load %arg3[%c0_7, %c0_8] : memref<128x32xf32, #tpu.memory_space<vmem>>, vector<128x32xf32>
    %cst_9 = arith.constant dense<0.000000e+00> : vector<8x32xf32>
    %17 = tpu.matmul %15, %16, %cst_9 {dimension_numbers = #tpu.dot_dimension_numbers<[1], [0], [0], [1], [0, 0, 1, 1], [], []>} : vector<8x128xf32>, vector<128x32xf32>, vector<8x32xf32> -> vector<8x32xf32>
    %c0_10 = arith.constant 0 : index
    %c0_11 = arith.constant 0 : index
    %18 = vector.load %arg4[%c0_10, %c0_11] : memref<8x32xf32, #tpu.memory_space<vmem>>, vector<8x32xf32>
    tpu.vector_store %arg4[%c0_10, %c0_11], %17 {strides = array<i32>} : memref<8x32xf32, #tpu.memory_space<vmem>>, vector<8x32xf32>,
    return
  }
  func.func @transform_0(%arg0: i32) -> (i32, i32) {
    %c0_i32 = arith.constant 0 : i32
    %c0_i32_0 = arith.constant 0 : i32
    return %arg0, %c0_i32 : i32, i32
  }
  func.func @transform_1(%arg0: i32) -> (i32, i32) {
    %c0_i32 = arith.constant 0 : i32
    %c0_i32_0 = arith.constant 0 : i32
    %c0_i32_1 = arith.constant 0 : i32
    return %c0_i32, %c0_i32_0 : i32, i32
  }
  func.func @transform_2(%arg0: i32) -> (i32, i32) {
    %c0_i32 = arith.constant 0 : i32
    %c0_i32_0 = arith.constant 0 : i32
    %c0_i32_1 = arith.constant 0 : i32
    return %c0_i32, %c0_i32_0 : i32, i32
  }
  func.func @transform_3(%arg0: i32) -> (i32, i32) {
    %c0_i32 = arith.constant 0 : i32
    %c0_i32_0 = arith.constant 0 : i32
    return %arg0, %c0_i32 : i32, i32
  }
}

module attributes {stable_mosaic.version = 11 : i64} {
  func.func @_mlp_kernel_resident(%arg0: i32, %arg1: memref<8x32xf32, #tpu.memory_space<vmem>>, %arg2: memref<32x128xf32, #tpu.memory_space<vmem>>, %arg3: memref<128x32xf32, #tpu.memory_space<vmem>>, %arg4: memref<8x32xf32, #tpu.memory_space<vmem>>) attributes {dimension_semantics = [#tpu.dimension_semantics<parallel>], iteration_bounds = array<i64: 2>, scalar_prefetch = 0 : i64, scratch_operands = 0 : i64, tpu.core_type = #tpu.core_type<tc>, window_params = [{transform_indices = @transform_0, window_bounds = array<i64: 8, 32>}, {pipeline_mode = #tpu.pipeline_mode<synchronous>, transform_indices = @transform_1, window_bounds = array<i64: 32, 128>}, {pipeline_mode = #tpu.pipeline_mode<synchronous>, transform_indices = @transform_2, window_bounds = array<i64: 128, 32>}, {transform_indices = @transform_3, window_bounds = array<i64: 8, 32>}]} {
    %c0 = arith.constant 0 : index
    %c0_0 = arith.constant 0 : index
    %0 = vector.load %arg1[%c0, %c0_0] : memref<8x32xf32, #tpu.memory_space<vmem>>, vector<8x32xf32>
    %c0_1 = arith.constant 0 : index
    %c0_2 = arith.constant 0 : index
    %1 = vector.load %arg2[%c0_1, %c0_2] : memref<32x128xf32, #tpu.memory_space<vmem>>, vector<32x128xf32>
    %cst = arith.constant dense<0.000000e+00> : vector<8x128xf32>
    %2 = tpu.matmul %0, %1, %cst {dimension_numbers = #tpu.dot_dimension_numbers<[1], [0], [0], [1], [0, 0, 1, 1], [], []>} : vector<8x32xf32>, vector<32x128xf32>, vector<8x128xf32> -> vector<8x128xf32>
    %cst_3 = arith.constant 5.000000e-01 : f32
    %3 = vector.broadcast %cst_3 : f32 to vector<8x128xf32>
    %4 = arith.mulf %3, %2 : vector<8x128xf32>
    %cst_4 = arith.constant 4.471500e-02 : f32
    %5 = vector.broadcast %cst_4 : f32 to vector<8x128xf32>
    %6 = arith.mulf %5, %2 : vector<8x128xf32>
    %7 = arith.mulf %6, %2 : vector<8x128xf32>
    %8 = arith.mulf %7, %2 : vector<8x128xf32>
    %9 = arith.addf %2, %8 : vector<8x128xf32>
    %cst_5 = arith.constant 0.797884583 : f32
    %10 = vector.broadcast %cst_5 : f32 to vector<8x128xf32>
    %11 = arith.mulf %10, %9 : vector<8x128xf32>
    %12 = math.tanh %11 : vector<8x128xf32>
    %cst_6 = arith.constant 1.000000e+00 : f32
    %13 = vector.broadcast %cst_6 : f32 to vector<8x128xf32>
    %14 = arith.addf %13, %12 : vector<8x128xf32>
    %15 = arith.mulf %4, %14 : vector<8x128xf32>
    %c0_7 = arith.constant 0 : index
    %c0_8 = arith.constant 0 : index
    %16 = vector.load %arg3[%c0_7, %c0_8] : memref<128x32xf32, #tpu.memory_space<vmem>>, vector<128x32xf32>
    %cst_9 = arith.constant dense<0.000000e+00> : vector<8x32xf32>
    %17 = tpu.matmul %15, %16, %cst_9 {dimension_numbers = #tpu.dot_dimension_numbers<[1], [0], [0], [1], [0, 0, 1, 1], [], []>} : vector<8x128xf32>, vector<128x32xf32>, vector<8x32xf32> -> vector<8x32xf32>
    %c0_10 = arith.constant 0 : index
    %c0_11 = arith.constant 0 : index
    %18 = vector.load %arg4[%c0_10, %c0_11] : memref<8x32xf32, #tpu.memory_space<vmem>>, vector<8x32xf32>
    tpu.vector_store %arg4[%c0_10, %c0_11], %17 {strides = array<i32>} : memref<8x32xf32, #tpu.memory_space<vmem>>, vector<8x32xf32>,
    return
  }
  func.func @transform_0(%arg0: i32) -> (i32, i32) {
    %c0_i32 = arith.constant 0 : i32
    %c0_i32_0 = arith.constant 0 : i32
    return %arg0, %c0_i32 : i32, i32
  }
  func.func @transform_1(%arg0: i32) -> (i32, i32) {
    %c0_i32 = arith.constant 0 : i32
    %c0_i32_0 = arith.constant 0 : i32
    %c0_i32_1 = arith.constant 0 : i32
    return %c0_i32, %c0_i32_0 : i32, i32
  }
  func.func @transform_2(%arg0: i32) -> (i32, i32) {
    %c0_i32 = arith.constant 0 : i32
    %c0_i32_0 = arith.constant 0 : i32
    %c0_i32_1 = arith.constant 0 : i32
    return %c0_i32, %c0_i32_0 : i32, i32
  }
  func.func @transform_3(%arg0: i32) -> (i32, i32) {
    %c0_i32 = arith.constant 0 : i32
    %c0_i32_0 = arith.constant 0 : i32
    return %arg0, %c0_i32 : i32, i32
  }
}

</mosaic_0001>

<bundles_post_ra>
// kernel: tpu_custom_call.1
= control target key start
LH: loop header
LB: loop body
LE: loop exit
PB: predicated region body
PF: predicated region fallthrough
CT: control target
= control target key end

     0   :  { %8 = vsyncpa [#allocation3], 0  ;;  %s804_s0 = inlined_call_operand.vmem [shape: f32[16,32], index: 0, kind: input, shape index: {}]   ;;  %s805_s1 = inlined_call_operand.vmem [shape: f32[32,128], index: 1, kind: input, shape index: {}]   ;;  %s806_s2 = inlined_call_operand.vmem [shape: f32[128,32], index: 2, kind: input, shape index: {}]   ;;  %s807_s3 = inlined_call_operand.hbm [shape: f32[16,32], index: 3, kind: output, shape index: {}]  }
   0x1   :  { %10 = vsyncpa [#allocation3 + $0x1], 0  ;;  %s621_s12 = smov 0   ;;  %s623_s13 = smov 0  }
   0x2   :  { %s625_s14 = smov 0   ;;  %s627_s15 = smov 0  }
   0x3 LB: > { %s642_s16 = sadd.s32 4294967295, %s596_s15   ;;  %s414_s17 = sadd.s32 4294967294, %s596_s15   ;;  %s596_s15 = sphi %s627_s15, %s813_s15   ;;  %s592_s14 = sphi %s625_s14, %s812_s14   ;;  %s588_s13 = sphi %s623_s13, %s811_s13   ;;  %s584_s12 = sphi %s621_s12, %s810_s12  }
   0x4   : > { %s646_s18 = sadd.s32 1, %s596_s15   ;;  %s91_s19 = sadd.s32 1, %s592_s14 }
   0x5   : > { %s88_s20 = ssub.s32 %s596_s15, %s646_s18  ;;  %p101_p0 = scmp.ne.s32.totalorder %s592_s14, %s588_s13 }
   0x6   : > { %p89_p1 = scmp.eq.s32.totalorder %s88_s20, 0  ;;  %p102_p2 = scmp.eq.s32.totalorder %s642_s16, 1 }
   0x7   : > { %p107_p3 = scmp.ne.s32.totalorder %s588_s13, %s584_s12  ;;  %p108_p4 = scmp.eq.s32.totalorder %s414_s17, 1 }
   0x8   : > { %s657_s21 = scalar_select %p89_p1, %s592_s14, %s91_s19  }
   0x9   : > { %p659_p5 = por %p102_p2, %p101_p0  ;;  %p663_p6 = por %p108_p4, %p107_p3 }
   0xa   : > { %p417_p7 = scmp.ge.s32.totalorder %s596_s15, 1  ;;  %p139_p8 = scmp.lt.s32.totalorder %s596_s15, 3 }
   0xc   : > { %p140_p9 = pnand %p417_p7, %p139_p8 }
   0xd   : > { %p162_p10 = scmp.lt.s32.totalorder (!%p140_p9), %s642_s16, 1  ;;  %s422_s8 = sshll.u32 (!%p140_p9), %s642_s16, 7 }
   0xe   : > { %143 = sbr.rel (%p140_p9) target bundleno = 456 (0x1c8), region = 32  ;;  %s762_s19 = scalar_lea.hbm (!%p140_p9), %s807_s3, %s422_s8 }
  0x13   : > { %v170_v0 = vld [vmem:[%s805_s1 + $0x18] sm:$0xff]  ;;  %v598_v1 = vmov 0.0   ;;  %v169_v2 = vld [vmem:[%s805_s1 + $0x10] sm:$0xff]  ;;  %vm599_vm0 = vmmov 0   ;;  %s163_s30 = scalar_select %p162_p10, %s642_s16, 1  ;;  %v168_v4 = vld [vmem:[%s805_s1 + $0x8] sm:$0xff] }
  0x14   : > { %447 = vmatprep.subr.mxu0 %v598_v1  ;;  %455 = vmatprep.mubr.msk.f32.mxu0 %vm599_vm0, %v598_v1  ;;  %v269_v3 = vld [vmem:[%s806_s2 + $0x78] sm:$0xff]  ;;  %v167_v5 = vld [vmem:[%s805_s1] sm:$0xff]  ;;  %vm171_vm1 = vcmask 261120   ;;  %v268_v7 = vld [vmem:[%s806_s2 + $0x70] sm:$0xff]  ;;  %s600_s16 = smov [#allocation2]  }
  0x15   : > { %448 = vmatpush3.msra.mxu0 %v170_v0  ;;  %458 = vmatprep.subr.mxu1 %v598_v1  ;;  %s419_s6 = sshll.u32 %s163_s30, 3  ;;  %v267_v8 = vld [vmem:[%s806_s2 + $0x68] sm:$0xff]  ;;  %v266_v9 = vld [vmem:[%s806_s2 + $0x60] sm:$0xff]  ;;  %v265_v10 = vld [vmem:[%s806_s2 + $0x58] sm:$0xff]  ;;  %s540_s25 = sshll.u32 %s600_s16, 4  ;;  %s541_s25 = int_to_ptr.vmem [resolvable:$false] %s540_s25 }
  0x16   : > { %449 = vmatprep.subr.mxu0 %v598_v1  ;;  %459 = vmatpush3.msra.mxu1 %v269_v3  ;;  %s165_s11 = scalar_lea.vmem %s804_s0, %s419_s6  ;;  %v264_v11 = vld [vmem:[%s806_s2 + $0x50] sm:$0xff]  ;;  %v263_v12 = vld [vmem:[%s806_s2 + $0x48] sm:$0xff]  ;;  %v262_v13 = vld [vmem:[%s806_s2 + $0x40] sm:$0xff]  ;;  %s159_s6 = sand.u32 1, %s588_s13  }
  0x17   : > { %450 = vmatpush3.msra.mxu0 %v169_v2  ;;  %460 = vmatprep.subr.mxu1 %v598_v1  ;;  %v166_v6 = vld [vmem:[%s165_s11] sm:$0xff]  ;;  %v261_v14 = vld [vmem:[%s806_s2 + $0x38] sm:$0xff]  ;;  %v260_v15 = vld [vmem:[%s806_s2 + $0x30] sm:$0xff]  ;;  %s418_s7 = sshll.u32 %s159_s6, 3  ;;  %s342_s20 = scalar_lea.sflag [#allocation3], %s159_s6 }
  0x18   : > { %451 = vmatprep.subr.mxu0 %v598_v1  ;;  %490 = vmatprep.mubr.msk.f32.mxu1 %vm599_vm0, %v598_v1  ;;  %v259_v16 = vld [vmem:[%s806_s2 + $0x28] sm:$0xff]  ;;  %v258_v17 = vld [vmem:[%s806_s2 + $0x20] sm:$0xff]  ;;  %v257_v18 = vld [vmem:[%s806_s2 + $0x18] sm:$0xff]  ;;  %s161_s9 = scalar_lea.vmem [#allocation2], %s418_s7  ;;  %s542_s26 = scalar_lea.vmem %s541_s25, 256 }
  0x19   : > { %452 = vmatpush3.msra.mxu0 %v168_v4  ;;  %461 = vmatpush3.msra.mxu1 %v268_v7  ;;  %v256_v19 = vld [vmem:[%s806_s2 + $0x10] sm:$0xff]  ;;  %v255_v20 = vld [vmem:[%s806_s2 + $0x8] sm:$0xff]  ;;  %v254_v21 = vld [vmem:[%s806_s2] sm:$0xff]  ;;  %s355_s10 = sshll.u32 %s161_s9, 4  ;;  %s764_s10 = int_to_ptr.vmem [resolvable:$true] %s355_s10 }
  0x1a   : > { %453 = vmatprep.subr.mxu0 %v598_v1  ;;  %462 = vmatprep.subr.mxu1 %v598_v1  ;;  %s536_s24 = scalar_lea.vmem %s764_s10, 128  ;;  %p543_p0 = scmp.lt.s32.totalorder %s764_s10, %s541_s25 }
  0x1b   : > { %454 = vmatpush3.msra.mxu0 %v167_v5  ;;  %463 = vmatpush3.msra.mxu1 %v267_v8  ;;  %p537_p11 = scmp.ne.s32.totalorder %s764_s10, %s536_s24  ;;  %p544_p1 = scmp.lt.s32.totalorder %s542_s26, %s536_s24 }
  0x1c   : > { %456 = vmatmul.mubr.msk.f32.vlgmr.msra.gmra.mxu0 %vm171_vm1, %v166_v6  ;;  %464 = vmatprep.subr.mxu1 %v598_v1 }
  0x1d   : > { %465 = vmatpush3.msra.mxu1 %v266_v9  ;;  %p538_p12 = pnand %p537_p11, %p659_p5  ;;  %p545_p2 = por %p544_p1, %p543_p0 }
  0x1e   : > { %466 = vmatprep.subr.mxu1 %v598_v1 }
  0x1f   : > { %467 = vmatpush3.msra.mxu1 %v265_v10  ;;  %p539_p13 = pneg %p538_p12 }
  0x20   : > { %468 = vmatprep.subr.mxu1 %v598_v1 }
  0x21   : > { %469 = vmatpush3.msra.mxu1 %v264_v11  ;;  %p546_p3 = pnand %p545_p2, %p539_p13 }
  0x22   : > { %470 = vmatprep.subr.mxu1 %v598_v1 }
  0x23   : > { %471 = vmatpush3.msra.mxu1 %v263_v12 }
  0x24   : > { %472 = vmatprep.subr.mxu1 %v598_v1 }
  0x25   : > { %473 = vmatpush3.msra.mxu1 %v262_v13 }
  0x26   : > { %474 = vmatprep.subr.mxu1 %v598_v1 }
  0x27   : > { %475 = vmatpush3.msra.mxu1 %v261_v14 }
  0x28   : > { %476 = vmatprep.subr.mxu1 %v598_v1 }
  0x29   : > { %477 = vmatpush3.msra.mxu1 %v260_v15 }
  0x2a   : > { %478 = vmatprep.subr.mxu1 %v598_v1 }
  0x2b   : > { %479 = vmatpush3.msra.mxu1 %v259_v16 }
  0x2c   : > { %480 = vmatprep.subr.mxu1 %v598_v1 }
  0x2d   : > { %481 = vmatpush3.msra.mxu1 %v258_v17 }
  0x2e   : > { %482 = vmatprep.subr.mxu1 %v598_v1 }
  0x2f   : > { %483 = vmatpush3.msra.mxu1 %v257_v18 }
  0x30   : > { %484 = vmatprep.subr.mxu1 %v598_v1 }
  0x31   : > { %485 = vmatpush3.msra.mxu1 %v256_v19 }
  0x32   : > { %486 = vmatprep.subr.mxu1 %v598_v1 }
  0x33   : > { %487 = vmatpush3.msra.mxu1 %v255_v20 }
  0x34   : > { %488 = vmatprep.subr.mxu1 %v598_v1 }
  0x35   : > { %489 = vmatpush3.msra.mxu1 %v254_v21 }
  0xdc   : > { %v241_v22 = vpop.f32.mrf.mxu0 }
  0xdd   : > { %v246_v23 = vmul.f32 0.044715, %v241_v22  ;;  %v245_v30 = vmul.f32 0.5, %v241_v22 }
  0xde   : > { %v457_v24 = vpop.f32.mrf.mxu0 }
  0xdf   : > { %v247_v25 = vmul.f32 %v246_v23, %v241_v22 }
  0xe1   : > { %v248_v26 = vmul.f32 %v247_v25, %v241_v22 }
  0xe3   : > { %v249_v27 = vadd.f32 %v248_v26, %v241_v22 }
  0xe5   : > { %v250_v28 = vmul.f32 0.7978846, %v249_v27 }
  0xe7   : > { %534 = vtanh.f32 %v250_v28 }
  0xf4   : > { %v535_v29 = vpop.eup %534 }
  0xf5   : > { %v252_v31 = vadd.f32 1.0, %v535_v29 }
  0xf7   : > { %v253_v32 = vmul.f32 %v252_v31, %v245_v30 }
  0xf9   : > { %491 = vmatmul.mubr.f32.vlgmr.msra.gmra.mxu1 %v253_v32 }
 0x1b9   : > { %v336_v33 = vpop.f32.mrf.mxu1 }
 0x1ba   : > { %340 = vst.msk [vmem:[%s161_s9] sm:$0xff] %vm171_vm1, %v336_v33 }
 0x1bb   : > { %v492_v34 = vpop.f32.mrf.mxu1 }
 0x1bc   : > { %549 = shalt.err (!%p546_p3)
}
 0x1bd   : > { %s550_s27 = scalar_lea.hbm %s762_s19, 128  ;;  %s554_s30 = scalar_lea.hbm %s807_s3, 256 }
 0x1be   : > { %p551_p4 = scmp.ne.s32.totalorder %s762_s19, %s550_s27  ;;  %p555_p9 = scmp.lt.s32.totalorder %s762_s19, %s807_s3 }
 0x1bf   : > { %p556_p10 = scmp.lt.s32.totalorder %s554_s30, %s550_s27 }
 0x1c0   : > { %p552_p7 = pnand %p551_p4, %p659_p5 }
 0x1c1   : > { %p557_p11 = por %p556_p10, %p555_p9 }
 0x1c2   : > { %p553_p8 = pneg %p552_p7 }
 0x1c4   : > { %p558_p12 = pnand %p557_p11, %p553_p8 }
 0x1c6   : > { %561 = shalt.err (!%p558_p12)
}
 0x1c7   : > { %493 = dma.vmem_to_hbm [thread:$0]  (%p659_p5), %s764_s10, 128, %s762_s19, %s342_s20  }
 0x1c8 PF: > { %p499_p13 = scmp.ge.s32.totalorder %s596_s15, 2  ;;  %s367_s6 = sand.u32 1, %s584_s12  }
 0x1c9   : > { %s368_s7 = scalar_lea.sflag [#allocation3], %s367_s6 }
 0x1ca   : > { %p496_p0 = pnand %p499_p13, %p663_p6 }
 0x1cc   : > { %p497_p1 = pneg %p496_p0 }
 0x1ce   : > { %579 = dma.done.wait (%p497_p1), %s368_s7, 128  }
 0x1cf   : > { %581 = vsyncadd (%p497_p1), %s368_s7, 4294967168  ;;  %p13_p2 = scmp.ge.s32.totalorder %s646_s18, 4   ;;  %s810_s12 = smov %s588_s13 }
 0x1d0   : > { %s811_s13 = smov %s592_s14  ;;  %s812_s14 = smov %s657_s21 }
 0x1d1   : > { %s813_s15 = smov %s646_s18  ;;  %15 = sbr.rel (!%p13_p2) target bundleno = 3 (0x3), region = 67 }
 0x1d6   :  { %373 = vsyncpa [#allocation3], 1 }
 0x1d7   :  { %375 = vsyncpa [#allocation3 + $0x1], 1 }

// kernel: tpu_custom_call.1
= control target key start
LH: loop header
LB: loop body
LE: loop exit
PB: predicated region body
PF: predicated region fallthrough
CT: control target
= control target key end

     0   :  { %8 = vsyncpa [#allocation3], 0  ;;  %s804_s0 = inlined_call_operand.vmem [shape: f32[16,32], index: 0, kind: input, shape index: {}]   ;;  %s805_s1 = inlined_call_operand.vmem [shape: f32[32,128], index: 1, kind: input, shape index: {}]   ;;  %s806_s2 = inlined_call_operand.vmem [shape: f32[128,32], index: 2, kind: input, shape index: {}]   ;;  %s807_s3 = inlined_call_operand.hbm [shape: f32[16,32], index: 3, kind: output, shape index: {}]  }
   0x1   :  { %10 = vsyncpa [#allocation3 + $0x1], 0  ;;  %s621_s12 = smov 0   ;;  %s623_s13 = smov 0  }
   0x2   :  { %s625_s14 = smov 0   ;;  %s627_s15 = smov 0  }
   0x3 LB: > { %s642_s16 = sadd.s32 4294967295, %s596_s15   ;;  %s414_s17 = sadd.s32 4294967294, %s596_s15   ;;  %s596_s15 = sphi %s627_s15, %s813_s15   ;;  %s592_s14 = sphi %s625_s14, %s812_s14   ;;  %s588_s13 = sphi %s623_s13, %s811_s13   ;;  %s584_s12 = sphi %s621_s12, %s810_s12  }
   0x4   : > { %s646_s18 = sadd.s32 1, %s596_s15   ;;  %s91_s19 = sadd.s32 1, %s592_s14 }
   0x5   : > { %s88_s20 = ssub.s32 %s596_s15, %s646_s18  ;;  %p101_p0 = scmp.ne.s32.totalorder %s592_s14, %s588_s13 }
   0x6   : > { %p89_p1 = scmp.eq.s32.totalorder %s88_s20, 0  ;;  %p102_p2 = scmp.eq.s32.totalorder %s642_s16, 1 }
   0x7   : > { %p107_p3 = scmp.ne.s32.totalorder %s588_s13, %s584_s12  ;;  %p108_p4 = scmp.eq.s32.totalorder %s414_s17, 1 }
   0x8   : > { %s657_s21 = scalar_select %p89_p1, %s592_s14, %s91_s19  }
   0x9   : > { %p659_p5 = por %p102_p2, %p101_p0  ;;  %p663_p6 = por %p108_p4, %p107_p3 }
   0xa   : > { %p417_p7 = scmp.ge.s32.totalorder %s596_s15, 1  ;;  %p139_p8 = scmp.lt.s32.totalorder %s596_s15, 3 }
   0xc   : > { %p140_p9 = pnand %p417_p7, %p139_p8 }
   0xd   : > { %p162_p10 = scmp.lt.s32.totalorder (!%p140_p9), %s642_s16, 1  ;;  %s422_s8 = sshll.u32 (!%p140_p9), %s642_s16, 7 }
   0xe   : > { %143 = sbr.rel (%p140_p9) target bundleno = 456 (0x1c8), region = 32  ;;  %s762_s19 = scalar_lea.hbm (!%p140_p9), %s807_s3, %s422_s8 }
  0x13   : > { %v170_v0 = vld [vmem:[%s805_s1 + $0x18] sm:$0xff]  ;;  %v598_v1 = vmov 0.0   ;;  %v169_v2 = vld [vmem:[%s805_s1 + $0x10] sm:$0xff]  ;;  %vm599_vm0 = vmmov 0   ;;  %s163_s30 = scalar_select %p162_p10, %s642_s16, 1  ;;  %v168_v4 = vld [vmem:[%s805_s1 + $0x8] sm:$0xff] }
  0x14   : > { %447 = vmatprep.subr.mxu0 %v598_v1  ;;  %455 = vmatprep.mubr.msk.f32.mxu0 %vm599_vm0, %v598_v1  ;;  %v269_v3 = vld [vmem:[%s806_s2 + $0x78] sm:$0xff]  ;;  %v167_v5 = vld [vmem:[%s805_s1] sm:$0xff]  ;;  %vm171_vm1 = vcmask 261120   ;;  %v268_v7 = vld [vmem:[%s806_s2 + $0x70] sm:$0xff]  ;;  %s600_s16 = smov [#allocation2]  }
  0x15   : > { %448 = vmatpush3.msra.mxu0 %v170_v0  ;;  %458 = vmatprep.subr.mxu1 %v598_v1  ;;  %s419_s6 = sshll.u32 %s163_s30, 3  ;;  %v267_v8 = vld [vmem:[%s806_s2 + $0x68] sm:$0xff]  ;;  %v266_v9 = vld [vmem:[%s806_s2 + $0x60] sm:$0xff]  ;;  %v265_v10 = vld [vmem:[%s806_s2 + $0x58] sm:$0xff]  ;;  %s540_s25 = sshll.u32 %s600_s16, 4  ;;  %s541_s25 = int_to_ptr.vmem [resolvable:$false] %s540_s25 }
  0x16   : > { %449 = vmatprep.subr.mxu0 %v598_v1  ;;  %459 = vmatpush3.msra.mxu1 %v269_v3  ;;  %s165_s11 = scalar_lea.vmem %s804_s0, %s419_s6  ;;  %v264_v11 = vld [vmem:[%s806_s2 + $0x50] sm:$0xff]  ;;  %v263_v12 = vld [vmem:[%s806_s2 + $0x48] sm:$0xff]  ;;  %v262_v13 = vld [vmem:[%s806_s2 + $0x40] sm:$0xff]  ;;  %s159_s6 = sand.u32 1, %s588_s13  }
  0x17   : > { %450 = vmatpush3.msra.mxu0 %v169_v2  ;;  %460 = vmatprep.subr.mxu1 %v598_v1  ;;  %v166_v6 = vld [vmem:[%s165_s11] sm:$0xff]  ;;  %v261_v14 = vld [vmem:[%s806_s2 + $0x38] sm:$0xff]  ;;  %v260_v15 = vld [vmem:[%s806_s2 + $0x30] sm:$0xff]  ;;  %s418_s7 = sshll.u32 %s159_s6, 3  ;;  %s342_s20 = scalar_lea.sflag [#allocation3], %s159_s6 }
  0x18   : > { %451 = vmatprep.subr.mxu0 %v598_v1  ;;  %490 = vmatprep.mubr.msk.f32.mxu1 %vm599_vm0, %v598_v1  ;;  %v259_v16 = vld [vmem:[%s806_s2 + $0x28] sm:$0xff]  ;;  %v258_v17 = vld [vmem:[%s806_s2 + $0x20] sm:$0xff]  ;;  %v257_v18 = vld [vmem:[%s806_s2 + $0x18] sm:$0xff]  ;;  %s161_s9 = scalar_lea.vmem [#allocation2], %s418_s7  ;;  %s542_s26 = scalar_lea.vmem %s541_s25, 256 }
  0x19   : > { %452 = vmatpush3.msra.mxu0 %v168_v4  ;;  %461 = vmatpush3.msra.mxu1 %v268_v7  ;;  %v256_v19 = vld [vmem:[%s806_s2 + $0x10] sm:$0xff]  ;;  %v255_v20 = vld [vmem:[%s806_s2 + $0x8] sm:$0xff]  ;;  %v254_v21 = vld [vmem:[%s806_s2] sm:$0xff]  ;;  %s355_s10 = sshll.u32 %s161_s9, 4  ;;  %s764_s10 = int_to_ptr.vmem [resolvable:$true] %s355_s10 }
  0x1a   : > { %453 = vmatprep.subr.mxu0 %v598_v1  ;;  %462 = vmatprep.subr.mxu1 %v598_v1  ;;  %s536_s24 = scalar_lea.vmem %s764_s10, 128  ;;  %p543_p0 = scmp.lt.s32.totalorder %s764_s10, %s541_s25 }
  0x1b   : > { %454 = vmatpush3.msra.mxu0 %v167_v5  ;;  %463 = vmatpush3.msra.mxu1 %v267_v8  ;;  %p537_p11 = scmp.ne.s32.totalorder %s764_s10, %s536_s24  ;;  %p544_p1 = scmp.lt.s32.totalorder %s542_s26, %s536_s24 }
  0x1c   : > { %456 = vmatmul.mubr.msk.f32.vlgmr.msra.gmra.mxu0 %vm171_vm1, %v166_v6  ;;  %464 = vmatprep.subr.mxu1 %v598_v1 }
  0x1d   : > { %465 = vmatpush3.msra.mxu1 %v266_v9  ;;  %p538_p12 = pnand %p537_p11, %p659_p5  ;;  %p545_p2 = por %p544_p1, %p543_p0 }
  0x1e   : > { %466 = vmatprep.subr.mxu1 %v598_v1 }
  0x1f   : > { %467 = vmatpush3.msra.mxu1 %v265_v10  ;;  %p539_p13 = pneg %p538_p12 }
  0x20   : > { %468 = vmatprep.subr.mxu1 %v598_v1 }
  0x21   : > { %469 = vmatpush3.msra.mxu1 %v264_v11  ;;  %p546_p3 = pnand %p545_p2, %p539_p13 }
  0x22   : > { %470 = vmatprep.subr.mxu1 %v598_v1 }
  0x23   : > { %471 = vmatpush3.msra.mxu1 %v263_v12 }
  0x24   : > { %472 = vmatprep.subr.mxu1 %v598_v1 }
  0x25   : > { %473 = vmatpush3.msra.mxu1 %v262_v13 }
  0x26   : > { %474 = vmatprep.subr.mxu1 %v598_v1 }
  0x27   : > { %475 = vmatpush3.msra.mxu1 %v261_v14 }
  0x28   : > { %476 = vmatprep.subr.mxu1 %v598_v1 }
  0x29   : > { %477 = vmatpush3.msra.mxu1 %v260_v15 }
  0x2a   : > { %478 = vmatprep.subr.mxu1 %v598_v1 }
  0x2b   : > { %479 = vmatpush3.msra.mxu1 %v259_v16 }
  0x2c   : > { %480 = vmatprep.subr.mxu1 %v598_v1 }
  0x2d   : > { %481 = vmatpush3.msra.mxu1 %v258_v17 }
  0x2e   : > { %482 = vmatprep.subr.mxu1 %v598_v1 }
  0x2f   : > { %483 = vmatpush3.msra.mxu1 %v257_v18 }
  0x30   : > { %484 = vmatprep.subr.mxu1 %v598_v1 }
  0x31   : > { %485 = vmatpush3.msra.mxu1 %v256_v19 }
  0x32   : > { %486 = vmatprep.subr.mxu1 %v598_v1 }
  0x33   : > { %487 = vmatpush3.msra.mxu1 %v255_v20 }
  0x34   : > { %488 = vmatprep.subr.mxu1 %v598_v1 }
  0x35   : > { %489 = vmatpush3.msra.mxu1 %v254_v21 }
  0xdc   : > { %v241_v22 = vpop.f32.mrf.mxu0 }
  0xdd   : > { %v246_v23 = vmul.f32 0.044715, %v241_v22  ;;  %v245_v30 = vmul.f32 0.5, %v241_v22 }
  0xde   : > { %v457_v24 = vpop.f32.mrf.mxu0 }
  0xdf   : > { %v247_v25 = vmul.f32 %v246_v23, %v241_v22 }
  0xe1   : > { %v248_v26 = vmul.f32 %v247_v25, %v241_v22 }
  0xe3   : > { %v249_v27 = vadd.f32 %v248_v26, %v241_v22 }
  0xe5   : > { %v250_v28 = vmul.f32 0.7978846, %v249_v27 }
  0xe7   : > { %534 = vtanh.f32 %v250_v28 }
  0xf4   : > { %v535_v29 = vpop.eup %534 }
  0xf5   : > { %v252_v31 = vadd.f32 1.0, %v535_v29 }
  0xf7   : > { %v253_v32 = vmul.f32 %v252_v31, %v245_v30 }
  0xf9   : > { %491 = vmatmul.mubr.f32.vlgmr.msra.gmra.mxu1 %v253_v32 }
 0x1b9   : > { %v336_v33 = vpop.f32.mrf.mxu1 }
 0x1ba   : > { %340 = vst.msk [vmem:[%s161_s9] sm:$0xff] %vm171_vm1, %v336_v33 }
 0x1bb   : > { %v492_v34 = vpop.f32.mrf.mxu1 }
 0x1bc   : > { %549 = shalt.err (!%p546_p3)
}
 0x1bd   : > { %s550_s27 = scalar_lea.hbm %s762_s19, 128  ;;  %s554_s30 = scalar_lea.hbm %s807_s3, 256 }
 0x1be   : > { %p551_p4 = scmp.ne.s32.totalorder %s762_s19, %s550_s27  ;;  %p555_p9 = scmp.lt.s32.totalorder %s762_s19, %s807_s3 }
 0x1bf   : > { %p556_p10 = scmp.lt.s32.totalorder %s554_s30, %s550_s27 }
 0x1c0   : > { %p552_p7 = pnand %p551_p4, %p659_p5 }
 0x1c1   : > { %p557_p11 = por %p556_p10, %p555_p9 }
 0x1c2   : > { %p553_p8 = pneg %p552_p7 }
 0x1c4   : > { %p558_p12 = pnand %p557_p11, %p553_p8 }
 0x1c6   : > { %561 = shalt.err (!%p558_p12)
}
 0x1c7   : > { %493 = dma.vmem_to_hbm [thread:$0]  (%p659_p5), %s764_s10, 128, %s762_s19, %s342_s20  }
 0x1c8 PF: > { %p499_p13 = scmp.ge.s32.totalorder %s596_s15, 2  ;;  %s367_s6 = sand.u32 1, %s584_s12  }
 0x1c9   : > { %s368_s7 = scalar_lea.sflag [#allocation3], %s367_s6 }
 0x1ca   : > { %p496_p0 = pnand %p499_p13, %p663_p6 }
 0x1cc   : > { %p497_p1 = pneg %p496_p0 }
 0x1ce   : > { %579 = dma.done.wait (%p497_p1), %s368_s7, 128  }
 0x1cf   : > { %581 = vsyncadd (%p497_p1), %s368_s7, 4294967168  ;;  %p13_p2 = scmp.ge.s32.totalorder %s646_s18, 4   ;;  %s810_s12 = smov %s588_s13 }
 0x1d0   : > { %s811_s13 = smov %s592_s14  ;;  %s812_s14 = smov %s657_s21 }
 0x1d1   : > { %s813_s15 = smov %s646_s18  ;;  %15 = sbr.rel (!%p13_p2) target bundleno = 3 (0x3), region = 67 }
 0x1d6   :  { %373 = vsyncpa [#allocation3], 1 }
 0x1d7   :  { %375 = vsyncpa [#allocation3 + $0x1], 1 }

</bundles_post_ra>
